<compile_context>
chip_gen: v7x
topology: tpu7x:2x2x1
jax: 0.10.0
libtpu: 0.0.40
codegen_flags: <defaults>
</compile_context>

<pallas_src>
import math
import functools

import jax
import jax.numpy as jnp
from jax import lax
from jax.experimental import pallas as pl
from jax.experimental.pallas import tpu as pltpu


def _circle_softmax_kernel(tgt_ref, feat_ref, w_ref, out_ref,
                           *, scale, margin, tc, matmul_dtype):
    # tgt_ref  : (tb, 1)  int32   -- class targets for this batch tile
    # feat_ref : (tb, D)  float32 -- feature tile
    # w_ref    : (D, tc)  f32/bf16-- transposed class-weight tile (lane = class)
    # out_ref  : (tb, tc) float32 -- output logits tile
    j = pl.program_id(0)  # class-tile index (grid axis 0)

    eps2 = jnp.float32(1e-24)  # eps^2 for eps = 1e-12 (F.normalize default)
    m = jnp.float32(margin)
    s = jnp.float32(scale)

    f32 = feat_ref[...].astype(jnp.float32)
    w32 = w_ref[...].astype(jnp.float32)

    # Inverse feature norms, (tb, 1): square + lane-reduce + EUP rsqrt.
    inv_f = lax.rsqrt(jnp.maximum(jnp.sum(f32 * f32, axis=-1, keepdims=True), eps2))
    # Inverse class-weight norms, (1, tc): sublane-reduce over D (XLU) + rsqrt.
    # Folded into the epilogue instead of normalizing the (D, tc) tile.
    inv_w = lax.rsqrt(jnp.maximum(jnp.sum(w32 * w32, axis=0, keepdims=True), eps2))

    # (tb, D) x (D, tc) MXU matmul, f32 accumulation; normalization folded in
    # as a (tb,1) x (1,tc) epilogue scale on the already-materialized result.
    if matmul_dtype is not None and matmul_dtype != jnp.float32:
        fm = feat_ref[...].astype(matmul_dtype)
        wm = w_ref[...].astype(matmul_dtype)
    else:
        fm, wm = f32, w32
    sim = jnp.dot(fm, wm, preferred_element_type=jnp.float32) * inv_f * inv_w

    # One-hot(targets) for this class tile via iota compare.
    tb, _ = out_ref.shape
    col = j * tc + lax.broadcasted_iota(jnp.int32, (tb, tc), 1)
    onehot = col == tgt_ref[...]                            # (tb, tc) bool

    # Fused circle-loss epilogue (select-then-compute):
    #   positive classes: alpha = relu(1 + m - sim), delta = 1 - m
    #   negative classes: alpha = relu(sim + m),     delta = m
    alpha = jnp.maximum(jnp.where(onehot, 1.0 - sim, sim) + m, 0.0)
    delta = jnp.where(onehot, 1.0 - m, m)
    out_ref[...] = (s * alpha * (sim - delta)).astype(out_ref.dtype)


def _tile_bytes(tb, tc, D, w_itemsize):
    # Double-buffered weight + output tiles, plus (possibly pipelined)
    # features/targets tiles.  All in bytes.
    return (2 * D * tc * w_itemsize          # weight tile (double-buffered)
            + 2 * tb * tc * 4                # output tile (double-buffered)
            + 2 * tb * D * 4                 # feature tile
            + 2 * tb * 4)                    # targets tile


def _pick_batch_tile(B, max_tile=256):
    """Whole batch resident when small; otherwise a multiple-of-8 divisor."""
    if B <= max_tile:
        return B
    for tb in range(max_tile, 7, -8):
        if B % tb == 0:
            return tb
    return B


def _pick_class_tile(C, D, tb, w_itemsize, budget_bytes=20 << 20):
    """Single step (tc = C) whenever the tiles fit the VMEM budget — per-step
    overhead (~600 cyc) dominates at small sizes, and there is no dual-TC win
    until per-step work is large.  Otherwise the largest lane-dense
    (multiple-of-128) divisor of C that fits the budget (safe on v7x 64 MiB)."""
    if _tile_bytes(tb, C, D, w_itemsize) <= budget_bytes:
        return C
    best = 0
    t = 128
    while t <= C:
        if C % t == 0 and _tile_bytes(tb, t, D, w_itemsize) <= budget_bytes:
            best = t
        t += 128
    if best:
        return best
    for t in range(min(C, 128), 0, -1):       # last-resort non-lane-dense divisor
        if C % t == 0 and _tile_bytes(tb, t, D, w_itemsize) <= budget_bytes:
            return t
    return C


def circle_softmax(features, weight_t, targets, *, scale, margin,
                   tc=None, tb=None, matmul_dtype=None, out_dtype=jnp.float32):
    """features: (B, D) f32, weight_t: (D, C) (weight stored transposed once at
    parameter init), targets: (B,) int -> (B, C) logits.

    matmul_dtype: optionally jnp.bfloat16 to halve weight/feature MXU-operand
    width for production D / HBM-bound C (f32 accumulation and f32 norms are
    kept); valid on v5e/v6e/v7x MXUs.  Default f32.
    """
    B, D = features.shape
    Dw, C = weight_t.shape
    assert Dw == D
    w_itemsize = jnp.dtype(weight_t.dtype).itemsize

    if tb is None:
        tb = _pick_batch_tile(B)
    assert B % tb == 0, "batch must be a multiple of the batch tile"
    if tc is None:
        tc = _pick_class_tile(C, D, tb, w_itemsize)
    assert C % tc == 0, "num_classes must be a multiple of the class tile"

    tgt2d = targets.astype(jnp.int32).reshape(B, 1)

    kernel = functools.partial(_circle_softmax_kernel, scale=scale,
                               margin=margin, tc=tc, matmul_dtype=matmul_dtype)

    # Raise the scoped-VMEM limit only when the tile estimate exceeds the most
    # restrictive default (v5e: 16 MiB); cap well below v7x's 64 MiB physical.
    est = _tile_bytes(tb, tc, D, w_itemsize)
    vmem_limit = None
    if est > (12 << 20):
        vmem_limit = min(48 << 20, max(32 << 20, 2 * est))

    compiler_params = pltpu.CompilerParams(
        dimension_semantics=("parallel", "parallel"),
        vmem_limit_bytes=vmem_limit,
    )

    # Grid: class-tile axis OUTER, batch-tile axis INNER.  The weight
    # index_map is constant over the inner (batch) axis, so the resident
    # weight tile is not re-DMA'd across batch steps.
    return pl.pallas_call(
        kernel,
        out_shape=jax.ShapeDtypeStruct((B, C), out_dtype),
        grid_spec=pltpu.PrefetchScalarGridSpec(
            num_scalar_prefetch=0,
            grid=(C // tc, B // tb),
            in_specs=[
                pl.BlockSpec((tb, 1), lambda j, i: (i, 0)),    # targets
                pl.BlockSpec((tb, D), lambda j, i: (i, 0)),    # features
                pl.BlockSpec((D, tc), lambda j, i: (0, j)),    # weight (D, C) tile
            ],
            out_specs=pl.BlockSpec((tb, tc), lambda j, i: (i, j)),
        ),
        compiler_params=compiler_params,
    )(tgt2d, features, weight_t)


def _reference(features, weight, targets, *, scale, margin):
    eps = 1e-12
    f_n = features / jnp.maximum(
        jnp.linalg.norm(features, axis=-1, keepdims=True), eps)
    w_n = weight / jnp.maximum(
        jnp.linalg.norm(weight, axis=-1, keepdims=True), eps)
    sim = f_n @ w_n.T
    alpha_p = jnp.maximum(-sim + 1.0 + margin, 0.0)
    alpha_n = jnp.maximum(sim + margin, 0.0)
    s_p = scale * alpha_p * (sim - (1.0 - margin))
    s_n = scale * alpha_n * (sim - margin)
    onehot = jax.nn.one_hot(targets, weight.shape[0], dtype=jnp.float32)
    return onehot * s_p + (1.0 - onehot) * s_n


if __name__ == "__main__":
    B = 8           # batch
    IN_FEAT = 32    # in_feat
    NUM_CLASSES = 256
    SCALE = 64.0
    MARGIN = 0.25

    key = jax.random.PRNGKey(0)
    k_feat, k_w, k_tgt = jax.random.split(key, 3)

    features = jax.random.normal(k_feat, (B, IN_FEAT), dtype=jnp.float32)

    # kaiming_uniform_(a=sqrt(5)) on (num_classes, in_feat):
    # bound = sqrt(6 / ((1 + a^2) * fan_in)) = 1 / sqrt(fan_in)
    bound = 1.0 / math.sqrt(IN_FEAT)
    weight = jax.random.uniform(
        k_w, (NUM_CLASSES, IN_FEAT), dtype=jnp.float32, minval=-bound, maxval=bound)
    # One-time transposed copy (in a real model this is how the parameter is
    # stored at init, not a per-call transpose).
    weight_t = jnp.asarray(weight.T)                         # (D, C)

    targets = jax.random.randint(k_tgt, (B,), 0, NUM_CLASSES, dtype=jnp.int32)

    out = circle_softmax(features, weight_t, targets, scale=SCALE, margin=MARGIN)
    out = jax.block_until_ready(out)

    ref = _reference(features, weight, targets, scale=SCALE, margin=MARGIN)
    assert out.shape == (B, NUM_CLASSES)
    assert jnp.allclose(out, ref, atol=1e-3, rtol=1e-3)

    print("KERNEL_OK")
</pallas_src>

<mosaic_0001>
module attributes {stable_mosaic.version = 11 : i64} {
  func.func @_circle_softmax_kernel(%arg0: i32, %arg1: i32, %arg2: memref<8x1xi32, #tpu.memory_space<vmem>>, %arg3: memref<8x32xf32, #tpu.memory_space<vmem>>, %arg4: memref<32x256xf32, #tpu.memory_space<vmem>>, %arg5: memref<8x256xf32, #tpu.memory_space<vmem>>) attributes {dimension_semantics = [#tpu.dimension_semantics<parallel>, #tpu.dimension_semantics<parallel>], iteration_bounds = array<i64: 1, 1>, scalar_prefetch = 0 : i64, scratch_operands = 0 : i64, tpu.core_type = #tpu.core_type<tc>, window_params = [{transform_indices = @transform_0, window_bounds = array<i64: 8, 1>}, {transform_indices = @transform_1, window_bounds = array<i64: 8, 32>}, {transform_indices = @transform_2, window_bounds = array<i64: 32, 256>}, {transform_indices = @transform_3, window_bounds = array<i64: 8, 256>}]} {
    %c0 = arith.constant 0 : index
    %c0_0 = arith.constant 0 : index
    %0 = vector.load %arg3[%c0, %c0_0] : memref<8x32xf32, #tpu.memory_space<vmem>>, vector<8x32xf32>
    %c0_1 = arith.constant 0 : index
    %c0_2 = arith.constant 0 : index
    %1 = vector.load %arg4[%c0_1, %c0_2] : memref<32x256xf32, #tpu.memory_space<vmem>>, vector<32x256xf32>
    %2 = arith.mulf %0, %0 : vector<8x32xf32>
    %cst = arith.constant dense<0.000000e+00> : vector<8xf32>
    %3 = vector.multi_reduction <add>, %2, %cst [1] : vector<8x32xf32> to vector<8xf32>
    %4 = vector.shape_cast %3 : vector<8xf32> to vector<8x1xf32>
    %cst_3 = arith.constant 1.000000e-24 : f32
    %5 = vector.broadcast %cst_3 : f32 to vector<8x1xf32>
    %6 = arith.maximumf %4, %5 : vector<8x1xf32>
    %7 = math.rsqrt %6 : vector<8x1xf32>
    %8 = arith.mulf %1, %1 : vector<32x256xf32>
    %cst_4 = arith.constant dense<0.000000e+00> : vector<256xf32>
    %9 = vector.multi_reduction <add>, %8, %cst_4 [0] : vector<32x256xf32> to vector<256xf32>
    %10 = vector.shape_cast %9 : vector<256xf32> to vector<1x256xf32>
    %cst_5 = arith.constant 1.000000e-24 : f32
    %11 = vector.broadcast %cst_5 : f32 to vector<1x256xf32>
    %12 = arith.maximumf %10, %11 : vector<1x256xf32>
    %13 = math.rsqrt %12 : vector<1x256xf32>
    %cst_6 = arith.constant dense<0.000000e+00> : vector<8x256xf32>
    %14 = tpu.matmul %0, %1, %cst_6 {dimension_numbers = #tpu.dot_dimension_numbers<[1], [0], [0], [1], [0, 0, 1, 1], [], []>} : vector<8x32xf32>, vector<32x256xf32>, vector<8x256xf32> -> vector<8x256xf32>
    %15 = vector.broadcast %7 : vector<8x1xf32> to vector<8x256xf32>
    %16 = arith.mulf %14, %15 : vector<8x256xf32>
    %17 = vector.broadcast %13 : vector<1x256xf32> to vector<8x256xf32>
    %18 = arith.mulf %16, %17 : vector<8x256xf32>
    %c256_i32 = arith.constant 256 : i32
    %19 = arith.muli %arg0, %c256_i32 : i32
    %20 = tpu.iota {dimensions = array<i32: 1>} : vector<8x256xi32>
    %21 = vector.broadcast %19 : i32 to vector<8x256xi32>
    %22 = arith.addi %21, %20 : vector<8x256xi32>
    %c0_7 = arith.constant 0 : index
    %c0_8 = arith.constant 0 : index
    %23 = vector.load %arg2[%c0_7, %c0_8] : memref<8x1xi32, #tpu.memory_space<vmem>>, vector<8x1xi32>
    %24 = vector.broadcast %23 : vector<8x1xi32> to vector<8x256xi32>
    %25 = arith.cmpi eq, %22, %24 : vector<8x256xi32>
    %cst_9 = arith.constant 1.000000e+00 : f32
    %26 = vector.broadcast %cst_9 : f32 to vector<8x256xf32>
    %27 = arith.subf %26, %18 : vector<8x256xf32>
    %28 = arith.select %25, %27, %18 : vector<8x256xi1>, vector<8x256xf32>
    %cst_10 = arith.constant 2.500000e-01 : f32
    %29 = vector.broadcast %cst_10 : f32 to vector<8x256xf32>
    %30 = arith.addf %28, %29 : vector<8x256xf32>
    %cst_11 = arith.constant 0.000000e+00 : f32
    %31 = vector.broadcast %cst_11 : f32 to vector<8x256xf32>
    %32 = arith.maximumf %30, %31 : vector<8x256xf32>
    %cst_12 = arith.constant 1.000000e+00 : f32
    %cst_13 = arith.constant 2.500000e-01 : f32
    %33 = arith.subf %cst_12, %cst_13 : f32
    %cst_14 = arith.constant 2.500000e-01 : f32
    %34 = vector.broadcast %33 : f32 to vector<8x256xf32>
    %35 = vector.broadcast %cst_14 : f32 to vector<8x256xf32>
    %36 = arith.select %25, %34, %35 : vector<8x256xi1>, vector<8x256xf32>
    %cst_15 = arith.constant 6.400000e+01 : f32
    %37 = vector.broadcast %cst_15 : f32 to vector<8x256xf32>
    %38 = arith.mulf %37, %32 : vector<8x256xf32>
    %39 = arith.subf %18, %36 : vector<8x256xf32>
    %40 = arith.mulf %38, %39 : vector<8x256xf32>
    %c0_16 = arith.constant 0 : index
    %c0_17 = arith.constant 0 : index
    %41 = vector.load %arg5[%c0_16, %c0_17] : memref<8x256xf32, #tpu.memory_space<vmem>>, vector<8x256xf32>
    tpu.vector_store %arg5[%c0_16, %c0_17], %40 {strides = array<i32>} : memref<8x256xf32, #tpu.memory_space<vmem>>, vector<8x256xf32>,
    return
  }
  func.func @transform_0(%arg0: i32, %arg1: i32) -> (i32, i32) {
    %c0_i32 = arith.constant 0 : i32
    %c0_i32_0 = arith.constant 0 : i32
    return %arg1, %c0_i32 : i32, i32
  }
  func.func @transform_1(%arg0: i32, %arg1: i32) -> (i32, i32) {
    %c0_i32 = arith.constant 0 : i32
    %c0_i32_0 = arith.constant 0 : i32
    return %arg1, %c0_i32 : i32, i32
  }
  func.func @transform_2(%arg0: i32, %arg1: i32) -> (i32, i32) {
    %c0_i32 = arith.constant 0 : i32
    %c0_i32_0 = arith.constant 0 : i32
    return %c0_i32, %arg0 : i32, i32
  }
  func.func @transform_3(%arg0: i32, %arg1: i32) -> (i32, i32) {
    %c0_i32 = arith.constant 0 : i32
    return %arg1, %arg0 : i32, i32
  }
}

</mosaic_0001>

<bundles_post_ra>
// kernel: tpu_custom_call.1
= control target key start
LH: loop header
LB: loop body
LE: loop exit
PB: predicated region body
PF: predicated region fallthrough
CT: control target
= control target key end

     0   :  { %8 = vsyncpa [#allocation3], 0  ;;  %s327_s0 = inlined_call_operand.vmem [shape: s32[8,1], index: 0, kind: input, shape index: {}]   ;;  %s328_s1 = inlined_call_operand.vmem [shape: f32[8,32], index: 1, kind: input, shape index: {}]   ;;  %s329_s2 = inlined_call_operand.hbm [shape: f32[32,256], index: 2, kind: input, shape index: {}]   ;;  %s330_s3 = inlined_call_operand.hbm [shape: f32[8,256], index: 3, kind: output, shape index: {}]  }
   0x1   :  { %9 = vsyncpa [#allocation4], 0  ;;  %s270_s12 = smov [#allocation2]   ;;  %s222_s16 = scalar_lea.hbm %s329_s2, 1024 }
   0x2   :  { %s19_s13 = sshll.u32 %s270_s12, 4  ;;  %p223_p0 = scmp.ne.s32.totalorder %s329_s2, %s222_s16  ;;  %s20_s13 = int_to_ptr.vmem [resolvable:$true] %s19_s13 }
   0x3   :  { %p226_p1 = scmp.lt.u32.totalorder %s222_s16, %s329_s2 }
   0x5   :  { %p228_p2 = pnand %p226_p1, %p223_p0 }
   0x7   :  { %231 = shalt.err (!%p228_p2)
}
   0x8   :  { %s232_s21 = scalar_lea.vmem %s20_s13, 1024  ;;  %p237_p4 = scmp.lt.s32.totalorder %s20_s13, %s20_s13 }
   0x9   :  { %p233_p3 = scmp.ne.s32.totalorder %s20_s13, %s232_s21  ;;  %p238_p5 = scmp.lt.s32.totalorder %s232_s21, %s232_s21 }
   0xb   :  { %p239_p6 = por %p238_p5, %p237_p4 }
   0xd   :  { %p240_p7 = pnand %p239_p6, %p233_p3 }
   0xf   :  { %243 = shalt.err (!%p240_p7)
}
  0x10   :  { %s271_s22 = smov 256   ;;  %s272_s23 = smov 16  }
  0x11   :  { %25 = dma.hbm_to_vmem [thread:$0]  %s329_s2, 1024, %s20_s13, [#allocation3], %s271_s22, %s271_s22, %s272_s23  }
  0x12   :  { %266 = dma.done.wait [#allocation3], 1024  }
  0x13   :  { %267 = vsyncadd [#allocation3], 4294966272  ;;  %v273_v0 = vmov 0.0   ;;  %v274_v1 = vmov 0   ;;  %v31_v2 = vld [vmem:[#allocation2 + $0x8] sm:$0xff]  ;;  %v33_v3 = vld [vmem:[#allocation2 + $0x18] sm:$0xff]  ;;  %v154_v48 = vlaneseq }
  0x14   :  { %142 = vmatprep.mubr.f32.mxu0 %v273_v0  ;;  %215 = vset.pattern.permute.xlu0 %v274_v1  ;;  %v30_v4 = vld [vmem:[#allocation2] sm:$0xff]  ;;  %v46_v5 = vmul.f32 %v31_v2, %v31_v2  ;;  %v48_v6 = vmul.f32 %v33_v3, %v33_v3  ;;  %v200_v7 = vpack.c.bf16 %v33_v3, %v31_v2  ;;  %v32_v8 = vld [vmem:[#allocation2 + $0x10] sm:$0xff]  ;;  %v35_v10 = vld [vmem:[#allocation2 + $0x28] sm:$0xff]  ;;  %vm39_vm0 = vcmask 261120  }
  0x15   :  { %v45_v9 = vmul.f32 %v30_v4, %v30_v4  ;;  %v37_v11 = vld [vmem:[#allocation2 + $0x38] sm:$0xff]  ;;  %v47_v12 = vmul.f32 %v32_v8, %v32_v8  ;;  %v202_v13 = vpack.c.bf16 %v32_v8, %v30_v4  ;;  %v50_v14 = vmul.f32 %v35_v10, %v35_v10  ;;  %v34_v15 = vld [vmem:[#allocation2 + $0x20] sm:$0xff]  ;;  %v36_v16 = vld [vmem:[#allocation2 + $0x30] sm:$0xff] }
  0x16   :  { %v62_v17 = vadd.f32 %v48_v6, %v46_v5  ;;  %201 = vmatprep.subr.bf16.mxu0 %v200_v7  ;;  %v52_v18 = vmul.f32 %v37_v11, %v37_v11  ;;  %v204_v19 = vpack.c.bf16 %v37_v11, %v35_v10  ;;  %v49_v20 = vmul.f32 %v34_v15, %v34_v15  ;;  %v29_v21 = vld [vmem:[%s328_s1] sm:$0xff] }
  0x17   :  { %v53_v22 = vadd.f32 %v47_v12, %v45_v9  ;;  %203 = vmatpush1.bf16.msra.mxu0 %v202_v13  ;;  %v51_v23 = vmul.f32 %v36_v16, %v36_v16  ;;  %v206_v24 = vpack.c.bf16 %v36_v16, %v34_v15  ;;  %v38_v25 = vmul.f32 %v29_v21, %v29_v21  ;;  %v160_v31 = vld [vmem:[%s327_s0] sm:$0xff]  ;;  %s276_s0 = smov [#allocation5]  }
  0x18   :  { %v63_v26 = vadd.f32 %v62_v17, %v50_v14  ;;  %205 = vmatprep.subr.bf16.mxu0 %v204_v19  ;;  %v155_v50 = vand.u32 127, %v154_v48  ;;  %v275_v3 = vmov 0.25   ;;  %s190_s1 = sshll.u32 %s276_s0, 4  ;;  %s191_s1 = int_to_ptr.vmem [resolvable:$true] %s190_s1 }
  0x19   :  { %v54_v27 = vadd.f32 %v53_v22, %v49_v20  ;;  %v40_v28 = vsel %vm39_vm0, %v38_v25, 0.0  ;;  %s244_s29 = scalar_lea.vmem %s191_s1, 256  ;;  %p249_p9 = scmp.lt.s32.totalorder %s191_s1, %s191_s1 }
  0x1a   :  { %v64_v29 = vadd.f32 %v63_v26, %v52_v18  ;;  %41 = vadd.xlane.f32.xlu0 %v40_v28  ;;  %v156_v58 = vadd.s32 128, %v155_v50  ;;  %p245_p8 = scmp.ne.s32.totalorder %s191_s1, %s244_s29  ;;  %p250_p10 = scmp.lt.s32.totalorder %s244_s29, %s244_s29 }
  0x1b   :  { %v55_v30 = vadd.f32 %v54_v27, %v51_v23  ;;  %207 = vmatpush1.bf16.msra.mxu0 %v206_v24 }
  0x1c   :  { %v65_v33 = vrot.slane %v64_v29, 4  ;;  %p251_p11 = por %p250_p10, %p249_p9 }
  0x1d   :  { %v56_v32 = vrot.slane %v55_v30, 4 }
  0x1e   :  { %199 = vmatmul.mubr.msk.f32.vlgmr.msra.gmra.mrb[0].mxu0 %vm39_vm0, %v29_v21  ;;  %v66_v35 = vadd.f32 %v65_v33, %v64_v29  ;;  %p252_p12 = pnand %p251_p11, %p245_p8 }
  0x1f   :  { %v57_v34 = vadd.f32 %v56_v32, %v55_v30 }
  0x20   :  { %v67_v37 = vrot.slane %v66_v35, 2 }
  0x21   :  { %v58_v36 = vrot.slane %v57_v34, 2 }
  0x22   :  { %v68_v39 = vadd.f32 %v67_v37, %v66_v35 }
  0x23   :  { %v59_v38 = vadd.f32 %v58_v36, %v57_v34 }
  0x24   :  { %v69_v41 = vrot.slane %v68_v39, 1 }
  0x25   :  { %v60_v40 = vrot.slane %v59_v38, 1 }
  0x26   :  { %v70_v44 = vadd.f32 %v69_v41, %v68_v39 }
  0x27   :  { %v61_v43 = vadd.f32 %v60_v40, %v59_v38 }
  0x28   :  { %v72_v47 = vmax.f32 %v70_v44, 1e-24 }
  0x29   :  { %v71_v46 = vmax.f32 %v61_v43, 1e-24 }
  0x30   :  { %162 = vperm.xlu0 %215, %v160_v31  }
  0xa7   :  { %v42_v42 = vpop.xlane.xlu0 %41 }
  0xa8   :  { %v43_v45 = vmax.f32 %v42_v42, 1e-24 }
  0xaa   :  { %216 = vrsqrt.f32 %v43_v45 }
  0xab   :  { %218 = vrsqrt.f32 %v71_v46 }
  0xac   :  { %220 = vrsqrt.f32 %v72_v47 }
  0xaf   :  { %v163_v59 = vpop.permute.xlu0 %162 }
  0xb0   :  { %vm164_vm1 = vcmp.eq.s32.totalorder %v155_v50, %v163_v59  ;;  %vm165_vm2 = vcmp.eq.s32.totalorder %v156_v58, %v163_v59 }
  0xb1   :  { %v174_v4 = vsel %vm164_vm1, 0.75, %v275_v3  ;;  %v175_v6 = vsel %vm165_vm2, 0.75, %v275_v3 }
  0xb4   :  { %v217_v49 = vpop.eup %216 }
  0xb5   :  { %v219_v51 = vpop.eup %218 }
  0xb6   :  { %v221_v53 = vpop.eup %220 }
  0xf1   :  { %v144_v52 = vpop.f32.mrb[0].mxu0 }
  0xf2   :  { %v149_v54 = vmul.f32 %v217_v49, %v144_v52  ;;  %v146_v55 = vpop.f32.mrb[1].mxu0 }
  0xf3   :  { %v150_v56 = vmul.f32 %v217_v49, %v146_v55 }
  0xf4   :  { %v151_v57 = vmul.f32 %v219_v51, %v149_v54 }
  0xf5   :  { %v152_v60 = vmul.f32 %v221_v53, %v150_v56 }
  0xf6   :  { %v166_v61 = vsub.f32 1.0, %v151_v57  ;;  %v178_v9 = vsub.f32 %v151_v57, %v174_v4 }
  0xf7   :  { %v167_v62 = vsub.f32 1.0, %v152_v60  ;;  %v179_v11 = vsub.f32 %v152_v60, %v175_v6 }
  0xf8   :  { %v168_v63 = vsel %vm164_vm1, %v166_v61, %v151_v57 }
  0xf9   :  { %v169_v0 = vsel %vm165_vm2, %v167_v62, %v152_v60  ;;  %v170_v1 = vadd.f32 0.25, %v168_v63 }
  0xfa   :  { %v171_v2 = vadd.f32 0.25, %v169_v0 }
  0xfb   :  { %v172_v5 = vmax.f32 %v170_v1, 0.0 }
  0xfc   :  { %v173_v7 = vmax.f32 %v171_v2, 0.0 }
  0xfd   :  { %v176_v8 = vmul.f32 64.0, %v172_v5 }
  0xfe   :  { %v177_v10 = vmul.f32 64.0, %v173_v7 }
  0xff   :  { %v180_v12 = vmul.f32 %v178_v9, %v176_v8 }
 0x100   :  { %v181_v13 = vmul.f32 %v179_v11, %v177_v10 }
 0x101   :  { %182 = vst [vmem:[#allocation5] sm:$0xff] %v180_v12 }
 0x102   :  { %183 = vst [vmem:[#allocation5 + $0x8] sm:$0xff] %v181_v13 }
 0x103   :  { %255 = shalt.err (!%p252_p12)
}
 0x104   :  { %s256_s5 = scalar_lea.hbm %s330_s3, 256 }
 0x105   :  { %p257_p13 = scmp.ne.s32.totalorder %s330_s3, %s256_s5  ;;  %p260_p0 = scmp.lt.u32.totalorder %s256_s5, %s330_s3 }
 0x107   :  { %p262_p1 = pnand %p260_p0, %p257_p13 }
 0x109   :  { %265 = shalt.err (!%p262_p1)
}
 0x10a   :  { %193 = dma.vmem_to_hbm [thread:$0]  %s191_s1, 256, %s330_s3, [#allocation4]  }
 0x10b   :  { %268 = dma.done.wait [#allocation4], 256  }
 0x10c   :  { %269 = vsyncadd [#allocation4], 4294967040 }
 0x10d   :  { %197 = vsyncpa [#allocation3], 1 }
 0x10e   :  { %198 = vsyncpa [#allocation4], 1 }

</bundles_post_ra>
